<compile_context>
chip_gen: v7x
topology: tpu7x:2x2x1
jax: 0.10.0
libtpu: 0.0.40
codegen_flags: <defaults>
</compile_context>

<pallas_src>
import functools
import math

import jax
import jax.numpy as jnp
from jax import lax
from jax.experimental import pallas as pl
from jax.experimental.pallas import tpu as pltpu


def hgnn_t_conv_v4_kernel(w_ref, u_ref, bias_ref, x_ref, g1_ref, g2_ref,
                          htm_ref, o_ref, *, g2_first, use_bf16):
    """Fused: out = g1 @ (ht_m * (g2 @ (x @ (weight * u)))) + bias."""
    mxu_dtype = jnp.bfloat16 if use_bf16 else jnp.float32

    # Parameter prep stays in f32 on the VPU; computed exactly once (no grid).
    w = w_ref[...] * u_ref[...]                                   # (F, F) f32

    w_m = w.astype(mxu_dtype)
    x_m = x_ref[...].astype(mxu_dtype)
    g2_m = g2_ref[...].astype(mxu_dtype)

    if g2_first:
        # h = (g2 @ x) @ w   -- cheaper when M < N (2MNF + 2MF^2 FLOPs).
        gx = jnp.dot(g2_m, x_m, preferred_element_type=jnp.float32)   # (M, F)
        h = jnp.dot(gx.astype(mxu_dtype), w_m,
                    preferred_element_type=jnp.float32)               # (M, F)
    else:
        # h = g2 @ (x @ w)   -- cheaper when N <= M (2NF^2 + 2MNF FLOPs).
        xw = jnp.dot(x_m, w_m, preferred_element_type=jnp.float32)    # (N, F)
        h = jnp.dot(g2_m, xw.astype(mxu_dtype),
                    preferred_element_type=jnp.float32)               # (M, F)

    h = htm_ref[...] * h                                               # f32 VPU
    out = jnp.dot(g1_ref[...].astype(mxu_dtype), h.astype(mxu_dtype),
                  preferred_element_type=jnp.float32)                  # (P, F)
    o_ref[...] = out + bias_ref[...]                                   # bias bcast


def hgnn_t_conv_v4_forward(x, g1, g2, ht_m, weight, u, bias=None,
                           *, use_bf16_matmul=True):
    N, F = x.shape
    M, N2 = g2.shape
    P, M2 = g1.shape
    assert N2 == N and M2 == M, "g1/g2/x shapes are inconsistent"
    assert ht_m.shape == (M, F)
    assert weight.shape == (F, F) and u.shape == (F, F)
    if bias is None:
        bias = jnp.zeros((F,), jnp.float32)
    bias2d = bias.reshape(1, F).astype(jnp.float32)  # lane-dense, broadcasts rows

    # Pick the cheaper matmul association statically from the shapes.
    g2_first = M < N
    if g2_first:
        mm_flops = 2 * M * N * F + 2 * M * F * F + 2 * P * M * F
    else:
        mm_flops = 2 * N * F * F + 2 * M * N * F + 2 * P * M * F
    flops = mm_flops + F * F + M * F + P * F  # + elementwise
    # HBM traffic is still f32 (bf16 casts happen in-kernel), so 4 B/elem.
    bytes_accessed = 4 * (2 * F * F + F + N * F + P * M + M * N + M * F + P * F)

    kernel = functools.partial(hgnn_t_conv_v4_kernel,
                               g2_first=g2_first, use_bf16=use_bf16_matmul)

    vmem_specs = [pl.BlockSpec(memory_space=pltpu.MemorySpace.VMEM)
                  for _ in range(7)]

    return pl.pallas_call(
        kernel,
        out_shape=jax.ShapeDtypeStruct((P, F), jnp.float32),
        in_specs=vmem_specs,
        out_specs=pl.BlockSpec(memory_space=pltpu.MemorySpace.VMEM),
        cost_estimate=pl.CostEstimate(flops=flops, transcendentals=0,
                                      bytes_accessed=bytes_accessed),
    )(weight, u, bias2d, x, g1, g2, ht_m)


def reference_forward(x, g1, g2, ht_m, weight, u, bias):
    """Pure-JAX f32 reference (HIGHEST precision so it is a true f32 baseline)."""
    hp = lax.Precision.HIGHEST
    w = weight * u
    h = jnp.dot(x, w, precision=hp)
    h = jnp.dot(g2, h, precision=hp)
    h = ht_m * h
    out = jnp.dot(g1, h, precision=hp)
    if bias is not None:
        out = out + bias
    return out


if __name__ == "__main__":
    # Small shapes consistent with the module: in_ft = F = 128 (lane-aligned),
    # N rows of x, g2:(M, N), ht_m:(M, F), g1:(P, M)  ->  out:(P, F).
    F = 128
    N, M, P = 64, 48, 32

    key = jax.random.PRNGKey(0)
    kw, kb, kx, kg1, kg2, kh, ku = jax.random.split(key, 7)

    # Parameters, init as in reset_parameters(): uniform(-stdv, stdv), stdv = 1/sqrt(in_ft)
    stdv = 1.0 / math.sqrt(F)
    weight = jax.random.uniform(kw, (F, F), jnp.float32, -stdv, stdv)
    bias = jax.random.uniform(kb, (F,), jnp.float32, -stdv, stdv)

    # Forward inputs
    x = jax.random.normal(kx, (N, F), jnp.float32)
    g1 = jax.random.normal(kg1, (P, M), jnp.float32)
    g2 = jax.random.normal(kg2, (M, N), jnp.float32)
    ht_m = jax.random.normal(kh, (M, F), jnp.float32)
    u = (jax.random.uniform(ku, (F, F)) > 0.5).astype(jnp.float32)  # structural mask

    ref = reference_forward(x, g1, g2, ht_m, weight, u, bias)
    scale = float(jnp.max(jnp.abs(ref)))

    # Main path: bf16 MXU operands, f32 accumulation.
    out = hgnn_t_conv_v4_forward(x, g1, g2, ht_m, weight, u, bias,
                                 use_bf16_matmul=True)
    out = jax.block_until_ready(out)
    err = float(jnp.max(jnp.abs(out - ref)))
    if not err <= 1e-2 * scale + 1e-2:  # bf16-operand tolerance
        raise AssertionError(
            f"bf16-MXU Pallas output mismatch: max abs err {err} (scale {scale})")

    # Full-f32 path: validates the (g2 @ x) @ w re-association at tight tolerance.
    out_f32 = hgnn_t_conv_v4_forward(x, g1, g2, ht_m, weight, u, bias,
                                     use_bf16_matmul=False)
    out_f32 = jax.block_until_ready(out_f32)
    err_f32 = float(jnp.max(jnp.abs(out_f32 - ref)))
    if not err_f32 <= 1e-3 * scale + 1e-3:
        raise AssertionError(
            f"f32 Pallas output mismatch: max abs err {err_f32} (scale {scale})")

    print("KERNEL_OK")
</pallas_src>

<mosaic_0001>
module attributes {stable_mosaic.version = 11 : i64} {
  func.func @hgnn_t_conv_v4_kernel(%arg0: memref<128x128xf32, #tpu.memory_space<vmem>>, %arg1: memref<128x128xf32, #tpu.memory_space<vmem>>, %arg2: memref<1x128xf32, #tpu.memory_space<vmem>>, %arg3: memref<64x128xf32, #tpu.memory_space<vmem>>, %arg4: memref<32x48xf32, #tpu.memory_space<vmem>>, %arg5: memref<48x64xf32, #tpu.memory_space<vmem>>, %arg6: memref<48x128xf32, #tpu.memory_space<vmem>>, %arg7: memref<32x128xf32, #tpu.memory_space<vmem>>) attributes {dimension_semantics = [], scalar_prefetch = 0 : i64, scratch_operands = 0 : i64, tpu.core_type = #tpu.core_type<tc>} {
    %c0 = arith.constant 0 : index
    %c0_0 = arith.constant 0 : index
    %0 = vector.load %arg0[%c0, %c0_0] : memref<128x128xf32, #tpu.memory_space<vmem>>, vector<128x128xf32>
    %c0_1 = arith.constant 0 : index
    %c0_2 = arith.constant 0 : index
    %1 = vector.load %arg1[%c0_1, %c0_2] : memref<128x128xf32, #tpu.memory_space<vmem>>, vector<128x128xf32>
    %2 = arith.mulf %0, %1 : vector<128x128xf32>
    %3 = arith.truncf %2 : vector<128x128xf32> to vector<128x128xbf16>
    %c0_3 = arith.constant 0 : index
    %c0_4 = arith.constant 0 : index
    %4 = vector.load %arg3[%c0_3, %c0_4] : memref<64x128xf32, #tpu.memory_space<vmem>>, vector<64x128xf32>
    %5 = arith.truncf %4 : vector<64x128xf32> to vector<64x128xbf16>
    %c0_5 = arith.constant 0 : index
    %c0_6 = arith.constant 0 : index
    %6 = vector.load %arg5[%c0_5, %c0_6] : memref<48x64xf32, #tpu.memory_space<vmem>>, vector<48x64xf32>
    %7 = arith.truncf %6 : vector<48x64xf32> to vector<48x64xbf16>
    %cst = arith.constant dense<0.000000e+00> : vector<48x128xf32>
    %8 = tpu.matmul %7, %5, %cst {dimension_numbers = #tpu.dot_dimension_numbers<[1], [0], [0], [1], [0, 0, 1, 1], [], []>} : vector<48x64xbf16>, vector<64x128xbf16>, vector<48x128xf32> -> vector<48x128xf32>
    %9 = arith.truncf %8 : vector<48x128xf32> to vector<48x128xbf16>
    %cst_7 = arith.constant dense<0.000000e+00> : vector<48x128xf32>
    %10 = tpu.matmul %9, %3, %cst_7 {dimension_numbers = #tpu.dot_dimension_numbers<[1], [0], [0], [1], [0, 0, 1, 1], [], []>} : vector<48x128xbf16>, vector<128x128xbf16>, vector<48x128xf32> -> vector<48x128xf32>
    %c0_8 = arith.constant 0 : index
    %c0_9 = arith.constant 0 : index
    %11 = vector.load %arg6[%c0_8, %c0_9] : memref<48x128xf32, #tpu.memory_space<vmem>>, vector<48x128xf32>
    %12 = arith.mulf %11, %10 : vector<48x128xf32>
    %c0_10 = arith.constant 0 : index
    %c0_11 = arith.constant 0 : index
    %13 = vector.load %arg4[%c0_10, %c0_11] : memref<32x48xf32, #tpu.memory_space<vmem>>, vector<32x48xf32>
    %14 = arith.truncf %13 : vector<32x48xf32> to vector<32x48xbf16>
    %15 = arith.truncf %12 : vector<48x128xf32> to vector<48x128xbf16>
    %cst_12 = arith.constant dense<0.000000e+00> : vector<32x128xf32>
    %16 = tpu.matmul %14, %15, %cst_12 {dimension_numbers = #tpu.dot_dimension_numbers<[1], [0], [0], [1], [0, 0, 1, 1], [], []>} : vector<32x48xbf16>, vector<48x128xbf16>, vector<32x128xf32> -> vector<32x128xf32>
    %c0_13 = arith.constant 0 : index
    %c0_14 = arith.constant 0 : index
    %17 = vector.load %arg2[%c0_13, %c0_14] : memref<1x128xf32, #tpu.memory_space<vmem>>, vector<1x128xf32>
    %18 = vector.broadcast %17 : vector<1x128xf32> to vector<32x128xf32>
    %19 = arith.addf %16, %18 : vector<32x128xf32>
    %c0_15 = arith.constant 0 : index
    %c0_16 = arith.constant 0 : index
    %20 = vector.load %arg7[%c0_15, %c0_16] : memref<32x128xf32, #tpu.memory_space<vmem>>, vector<32x128xf32>
    tpu.vector_store %arg7[%c0_15, %c0_16], %19 {strides = array<i32>} : memref<32x128xf32, #tpu.memory_space<vmem>>, vector<32x128xf32>,
    return
  }
}

</mosaic_0001>

<bundles_post_ra>
// kernel: tpu_custom_call.1
= control target key start
LH: loop header
LB: loop body
LE: loop exit
PB: predicated region body
PF: predicated region fallthrough
CT: control target
= control target key end

     0   :  { %12 = vsyncpa [#allocation3], 0  ;;  %s893_s0 = inlined_call_operand.hbm [shape: f32[128,128], index: 0, kind: input, shape index: {}]   ;;  %s894_s1 = inlined_call_operand.hbm [shape: f32[128,128], index: 1, kind: input, shape index: {}]   ;;  %s895_s2 = inlined_call_operand.vmem [shape: f32[1,128], index: 2, kind: input, shape index: {}]   ;;  %s896_s3 = inlined_call_operand.hbm [shape: f32[64,128], index: 3, kind: input, shape index: {}]   ;;  %s897_s4 = inlined_call_operand.hbm [shape: f32[32,48], index: 4, kind: input, shape index: {}]   ;;  %s898_s5 = inlined_call_operand.hbm [shape: f32[48,64], index: 5, kind: input, shape index: {}]   ;;  %s899_s6 = inlined_call_operand.hbm [shape: f32[48,128], index: 6, kind: input, shape index: {}]   ;;  %s900_s7 = inlined_call_operand.hbm [shape: f32[32,128], index: 7, kind: output, shape index: {}]  }
   0x1   :  { %13 = vsyncpa [#allocation6], 0 }
   0x2   :  { %14 = vsyncpa [#allocation9], 0 }
   0x3   :  { %15 = vsyncpa [#allocation12], 0 }
   0x4   :  { %16 = vsyncpa [#allocation4], 0  ;;  %s684_s24 = smov [#allocation5]   ;;  %s685_s26 = smov [#allocation8]  }
   0x5   :  { %s34_s25 = sshll.u32 %s684_s24, 4  ;;  %s60_s27 = sshll.u32 %s685_s26, 4  ;;  %s35_s25 = int_to_ptr.vmem [resolvable:$true] %s34_s25  ;;  %s735_s27 = int_to_ptr.vmem [resolvable:$true] %s60_s27 }
   0x6   :  { %s520_s30 = scalar_lea.hbm %s894_s1, 2048 }
   0x7   :  { %p521_p0 = scmp.ne.s32.totalorder %s894_s1, %s520_s30  ;;  %p524_p1 = scmp.lt.u32.totalorder %s520_s30, %s894_s1 }
   0x9   :  { %p526_p2 = pnand %p524_p1, %p521_p0 }
   0xb   :  { %529 = shalt.err (!%p526_p2)
}
   0xc   :  { %s530_s12 = scalar_lea.vmem %s35_s25, 2048  ;;  %p535_p4 = scmp.lt.s32.totalorder %s35_s25, %s35_s25 }
   0xd   :  { %p531_p3 = scmp.ne.s32.totalorder %s35_s25, %s530_s12  ;;  %p536_p5 = scmp.lt.s32.totalorder %s530_s12, %s530_s12 }
   0xf   :  { %p537_p6 = por %p536_p5, %p535_p4 }
  0x11   :  { %p538_p7 = pnand %p537_p6, %p531_p3 }
  0x13   :  { %541 = shalt.err (!%p538_p7)
}
  0x14   :  { %s686_s13 = smov 128   ;;  %s687_s14 = smov 8  }
  0x15   :  { %40 = dma.hbm_to_vmem [thread:$0]  %s894_s1, 2048, %s35_s25, [#allocation6], %s686_s13, %s686_s13, %s687_s14  }
  0x16   :  { %s542_s19 = scalar_lea.hbm %s897_s4, 512 }
  0x17   :  { %p543_p8 = scmp.ne.s32.totalorder %s897_s4, %s542_s19  ;;  %p546_p9 = scmp.lt.u32.totalorder %s542_s19, %s897_s4 }
  0x19   :  { %p548_p10 = pnand %p546_p9, %p543_p8 }
  0x1b   :  { %551 = shalt.err (!%p548_p10)
}
  0x1c   :  { %s552_s24 = scalar_lea.vmem %s735_s27, 512  ;;  %p557_p12 = scmp.lt.s32.totalorder %s735_s27, %s735_s27 }
  0x1d   :  { %p553_p11 = scmp.ne.s32.totalorder %s735_s27, %s552_s24  ;;  %p558_p13 = scmp.lt.s32.totalorder %s552_s24, %s552_s24 }
  0x1f   :  { %p559_p0 = por %p558_p13, %p557_p12 }
  0x21   :  { %p560_p1 = pnand %p559_p0, %p553_p11 }
  0x23   :  { %563 = shalt.err (!%p560_p1)
}
  0x24   :  { %66 = dma.hbm_to_vmem [thread:$0]  %s897_s4, 512, %s735_s27, [#allocation9], %s686_s13, %s686_s13, %s687_s14  }
  0x25   :  { %s688_s26 = smov [#allocation2]   ;;  %s689_s29 = smov [#allocation7]  }
  0x26   :  { %s22_s28 = sshll.u32 %s688_s26, 4  ;;  %s48_s30 = sshll.u32 %s689_s29, 4  ;;  %s23_s28 = int_to_ptr.vmem [resolvable:$true] %s22_s28  ;;  %s772_s30 = int_to_ptr.vmem [resolvable:$true] %s48_s30 }
  0x27   :  { %s564_s10 = scalar_lea.hbm %s893_s0, 2048 }
  0x28   :  { %p565_p2 = scmp.ne.s32.totalorder %s893_s0, %s564_s10  ;;  %p568_p3 = scmp.lt.u32.totalorder %s564_s10, %s893_s0 }
  0x2a   :  { %p570_p4 = pnand %p568_p3, %p565_p2 }
  0x2c   :  { %573 = shalt.err (!%p570_p4)
}
  0x2d   :  { %s574_s4 = scalar_lea.vmem %s23_s28, 2048  ;;  %p579_p6 = scmp.lt.s32.totalorder %s23_s28, %s23_s28 }
  0x2e   :  { %p575_p5 = scmp.ne.s32.totalorder %s23_s28, %s574_s4  ;;  %p580_p7 = scmp.lt.s32.totalorder %s574_s4, %s574_s4 }
  0x30   :  { %p581_p8 = por %p580_p7, %p579_p6 }
  0x32   :  { %p582_p9 = pnand %p581_p8, %p575_p5 }
  0x34   :  { %585 = shalt.err (!%p582_p9)
}
  0x35   :  { %28 = dma.hbm_to_vmem [thread:$0]  %s893_s0, 2048, %s23_s28, [#allocation3], %s686_s13, %s686_s13, %s687_s14  }
  0x36   :  { %s586_s20 = scalar_lea.hbm %s896_s3, 1024 }
  0x37   :  { %p587_p10 = scmp.ne.s32.totalorder %s896_s3, %s586_s20  ;;  %p590_p11 = scmp.lt.u32.totalorder %s586_s20, %s896_s3 }
  0x39   :  { %p592_p12 = pnand %p590_p11, %p587_p10 }
  0x3b   :  { %595 = shalt.err (!%p592_p12)
}
  0x3c   :  { %s596_s1 = scalar_lea.vmem %s772_s30, 1024  ;;  %p601_p0 = scmp.lt.s32.totalorder %s772_s30, %s772_s30 }
  0x3d   :  { %p597_p13 = scmp.ne.s32.totalorder %s772_s30, %s596_s1  ;;  %p602_p1 = scmp.lt.s32.totalorder %s596_s1, %s596_s1 }
  0x3f   :  { %p603_p2 = por %p602_p1, %p601_p0 }
  0x41   :  { %p604_p3 = pnand %p603_p2, %p597_p13 }
  0x43   :  { %607 = shalt.err (!%p604_p3)
}
  0x44   :  { %54 = dma.hbm_to_vmem [thread:$0]  %s896_s3, 1024, %s772_s30, [#allocation6], %s686_s13, %s686_s13, %s687_s14  }
  0x45   :  { %s690_s26 = smov [#allocation10]   ;;  %s691_s29 = smov [#allocation11]  }
  0x46   :  { %s72_s28 = sshll.u32 %s690_s26, 4  ;;  %s84_s8 = sshll.u32 %s691_s29, 4  ;;  %s73_s28 = int_to_ptr.vmem [resolvable:$true] %s72_s28  ;;  %s809_s8 = int_to_ptr.vmem [resolvable:$true] %s84_s8 }
  0x47   :  { %s608_s11 = scalar_lea.hbm %s898_s5, 768 }
  0x48   :  { %p609_p4 = scmp.ne.s32.totalorder %s898_s5, %s608_s11  ;;  %p612_p5 = scmp.lt.u32.totalorder %s608_s11, %s898_s5 }
  0x4a   :  { %p614_p6 = pnand %p612_p5, %p609_p4 }
  0x4c   :  { %617 = shalt.err (!%p614_p6)
}
  0x4d   :  { %s618_s3 = scalar_lea.vmem %s73_s28, 768  ;;  %p623_p8 = scmp.lt.s32.totalorder %s73_s28, %s73_s28 }
  0x4e   :  { %p619_p7 = scmp.ne.s32.totalorder %s73_s28, %s618_s3  ;;  %p624_p9 = scmp.lt.s32.totalorder %s618_s3, %s618_s3 }
  0x50   :  { %p625_p10 = por %p624_p9, %p623_p8 }
  0x52   :  { %p626_p11 = pnand %p625_p10, %p619_p7 }
  0x54   :  { %629 = shalt.err (!%p626_p11)
}
  0x55   :  { %78 = dma.hbm_to_vmem [thread:$0]  %s898_s5, 768, %s73_s28, [#allocation9], %s686_s13, %s686_s13, %s687_s14  }
  0x56   :  { %s630_s19 = scalar_lea.hbm %s899_s6, 768 }
  0x57   :  { %p631_p12 = scmp.ne.s32.totalorder %s899_s6, %s630_s19  ;;  %p634_p13 = scmp.lt.u32.totalorder %s630_s19, %s899_s6 }
  0x59   :  { %p636_p0 = pnand %p634_p13, %p631_p12 }
  0x5b   :  { %639 = shalt.err (!%p636_p0)
}
  0x5c   :  { %s640_s24 = scalar_lea.vmem %s809_s8, 768  ;;  %p645_p2 = scmp.lt.s32.totalorder %s809_s8, %s809_s8 }
  0x5d   :  { %p641_p1 = scmp.ne.s32.totalorder %s809_s8, %s640_s24  ;;  %p646_p3 = scmp.lt.s32.totalorder %s640_s24, %s640_s24 }
  0x5f   :  { %p647_p4 = por %p646_p3, %p645_p2 }
  0x61   :  { %p648_p5 = pnand %p647_p4, %p641_p1 }
  0x63   :  { %651 = shalt.err (!%p648_p5)
}
  0x64   :  { %90 = dma.hbm_to_vmem [thread:$0]  %s899_s6, 768, %s809_s8, [#allocation12], %s686_s13, %s686_s13, %s687_s14  }
  0x65   :  { %674 = dma.done.wait [#allocation3], 2048  }
  0x66   :  { %675 = vsyncadd [#allocation3], 4294965248 }
  0x67   :  { %676 = dma.done.wait [#allocation6], 3072  }
  0x68   :  { %677 = vsyncadd [#allocation6], 4294964224 }
  0x69   :  { %678 = dma.done.wait [#allocation9], 1280  }
  0x6a   :  { %679 = vsyncadd [#allocation9], 4294966016 }
  0x6b   :  { %680 = dma.done.wait [#allocation12], 768  }
  0x6c   :  { %681 = vsyncadd [#allocation12], 4294966528  ;;  %v692_v0 = vmov 0.0   ;;  %vm693_vm0 = vmmov 0   ;;  %v166_v1 = vld [vmem:[#allocation7] sm:$0xff]  ;;  %v167_v2 = vld [vmem:[#allocation7 + $0x8] sm:$0xff] }
  0x6d   :  { %451 = vmatprep.subr.bf16.mxu0 %v692_v0  ;;  %459 = vmatprep.mubr.msk.bf16.mxu0 %vm693_vm0, %v692_v0  ;;  %v168_v3 = vld [vmem:[#allocation7 + $0x10] sm:$0xff]  ;;  %v174_v4 = vpack.c.bf16 %v167_v2, %v166_v1  ;;  %v169_v5 = vld [vmem:[#allocation7 + $0x18] sm:$0xff]  ;;  %v170_v7 = vld [vmem:[#allocation7 + $0x20] sm:$0xff]  ;;  %vm187_vm1 = vcmask 523264   ;;  %vm342_vm2 = vcmask 392192   ;;  %s694_s25 = smov [#allocation13]  }
  0x6e   :  { %471 = vmatprep.subr.bf16.mxu1 %v692_v0  ;;  %487 = vmatprep.mubr.msk.bf16.mxu1 %vm693_vm0, %v692_v0  ;;  %v175_v6 = vpack.c.bf16 %v169_v5, %v168_v3  ;;  %v171_v8 = vld [vmem:[#allocation7 + $0x28] sm:$0xff]  ;;  %v110_v9 = vld [vmem:[#allocation2] sm:$0xff]  ;;  %v172_v13 = vld [vmem:[#allocation7 + $0x30] sm:$0xff]  ;;  %s407_s26 = sshll.u32 %s694_s25, 4  ;;  %s408_s26 = int_to_ptr.vmem [resolvable:$true] %s407_s26 }
  0x6f   :  { %452 = vmatpush3.bf16.msra.mxu0 %v174_v4  ;;  %v111_v10 = vld [vmem:[#allocation2 + $0x8] sm:$0xff]  ;;  %v126_v11 = vld [vmem:[#allocation5] sm:$0xff]  ;;  %v112_v16 = vld [vmem:[#allocation2 + $0x10] sm:$0xff]  ;;  %v176_v19 = vpack.c.bf16 %v171_v8, %v170_v7  ;;  %s652_s28 = scalar_lea.vmem %s408_s26, 512  ;;  %p657_p7 = scmp.lt.s32.totalorder %s408_s26, %s408_s26 }
  0x70   :  { %453 = vmatprep.subr.bf16.mxu0 %v692_v0  ;;  %v127_v12 = vld [vmem:[#allocation5 + $0x8] sm:$0xff]  ;;  %v142_v14 = vmul.f32 %v126_v11, %v110_v9  ;;  %v113_v17 = vld [vmem:[#allocation2 + $0x18] sm:$0xff]  ;;  %v128_v18 = vld [vmem:[#allocation5 + $0x10] sm:$0xff]  ;;  %p653_p6 = scmp.ne.s32.totalorder %s408_s26, %s652_s28  ;;  %p658_p8 = scmp.lt.s32.totalorder %s652_s28, %s652_s28 }
  0x71   :  { %v143_v15 = vmul.f32 %v127_v12, %v111_v10  ;;  %v129_v20 = vld [vmem:[#allocation5 + $0x18] sm:$0xff]  ;;  %v144_v21 = vmul.f32 %v128_v18, %v112_v16  ;;  %v114_v22 = vld [vmem:[#allocation2 + $0x20] sm:$0xff]  ;;  %v115_v23 = vld [vmem:[#allocation2 + $0x28] sm:$0xff] }
  0x72   :  { %v173_v24 = vld [vmem:[#allocation7 + $0x38] sm:$0xff]  ;;  %v145_v26 = vmul.f32 %v129_v20, %v113_v17  ;;  %v130_v27 = vld [vmem:[#allocation5 + $0x20] sm:$0xff]  ;;  %v131_v28 = vld [vmem:[#allocation5 + $0x28] sm:$0xff]  ;;  %p659_p9 = por %p658_p8, %p657_p7 }
  0x73   :  { %454 = vmatpush3.bf16.msra.mxu0 %v175_v6  ;;  %v158_v25 = vpack.c.bf16 %v143_v15, %v142_v14  ;;  %v178_v29 = vld [vmem:[#allocation10] sm:$0xff]  ;;  %v179_v30 = vld [vmem:[#allocation10 + $0x8] sm:$0xff]  ;;  %v146_v32 = vmul.f32 %v130_v27, %v114_v22  ;;  %v147_v33 = vmul.f32 %v131_v28, %v115_v23  ;;  %v116_v34 = vld [vmem:[#allocation2 + $0x30] sm:$0xff]  ;;  %v177_v35 = vpack.c.bf16 %v173_v24, %v172_v13 }
  0x74   :  { %455 = vmatprep.subr.bf16.mxu0 %v692_v0  ;;  %v159_v31 = vpack.c.bf16 %v145_v26, %v144_v21  ;;  %v117_v36 = vld [vmem:[#allocation2 + $0x38] sm:$0xff]  ;;  %v132_v37 = vld [vmem:[#allocation5 + $0x30] sm:$0xff]  ;;  %v184_v39 = vpack.c.bf16 %v179_v30, %v178_v29  ;;  %v118_v43 = vld [vmem:[#allocation2 + $0x40] sm:$0xff]  ;;  %p660_p10 = pnand %p659_p9, %p653_p6 }
  0x75   :  { %472 = vmatpush3.bf16.msra.mxu1 %v158_v25  ;;  %v133_v38 = vld [vmem:[#allocation5 + $0x38] sm:$0xff]  ;;  %v160_v40 = vpack.c.bf16 %v147_v33, %v146_v32  ;;  %v148_v41 = vmul.f32 %v132_v37, %v116_v34  ;;  %v119_v44 = vld [vmem:[#allocation2 + $0x48] sm:$0xff]  ;;  %v134_v45 = vld [vmem:[#allocation5 + $0x40] sm:$0xff] }
  0x76   :  { %473 = vmatprep.subr.bf16.mxu1 %v692_v0  ;;  %v149_v42 = vmul.f32 %v133_v38, %v117_v36  ;;  %v135_v46 = vld [vmem:[#allocation5 + $0x48] sm:$0xff]  ;;  %v180_v47 = vld [vmem:[#allocation10 + $0x10] sm:$0xff]  ;;  %v181_v48 = vld [vmem:[#allocation10 + $0x18] sm:$0xff]  ;;  %v150_v50 = vmul.f32 %v134_v45, %v118_v43 }
  0x77   :  { %456 = vmatpush3.bf16.msra.mxu0 %v176_v19  ;;  %v151_v51 = vmul.f32 %v135_v46, %v119_v44  ;;  %v120_v52 = vld [vmem:[#allocation2 + $0x50] sm:$0xff]  ;;  %v121_v53 = vld [vmem:[#allocation2 + $0x58] sm:$0xff]  ;;  %v185_v56 = vpack.c.bf16 %v181_v48, %v180_v47  ;;  %v122_v60 = vld [vmem:[#allocation2 + $0x60] sm:$0xff] }
  0x78   :  { %457 = vmatprep.subr.bf16.mxu0 %v692_v0  ;;  %v161_v49 = vpack.c.bf16 %v149_v42, %v148_v41  ;;  %v136_v54 = vld [vmem:[#allocation5 + $0x50] sm:$0xff]  ;;  %v137_v55 = vld [vmem:[#allocation5 + $0x58] sm:$0xff]  ;;  %v123_v61 = vld [vmem:[#allocation2 + $0x68] sm:$0xff] }
  0x79   :  { %474 = vmatpush3.bf16.msra.mxu1 %v159_v31  ;;  %v162_v57 = vpack.c.bf16 %v151_v51, %v150_v50  ;;  %v152_v58 = vmul.f32 %v136_v54, %v120_v52  ;;  %v153_v59 = vmul.f32 %v137_v55, %v121_v53  ;;  %v138_v62 = vld [vmem:[#allocation5 + $0x60] sm:$0xff]  ;;  %v139_v63 = vld [vmem:[#allocation5 + $0x68] sm:$0xff]  ;;  %v124_v8 = vld [vmem:[#allocation2 + $0x70] sm:$0xff] }
  0x7a   :  { %475 = vmatprep.subr.bf16.mxu1 %v692_v0  ;;  %v154_v2 = vmul.f32 %v138_v62, %v122_v60  ;;  %v155_v3 = vmul.f32 %v139_v63, %v123_v61  ;;  %v182_v4 = vld [vmem:[#allocation10 + $0x20] sm:$0xff]  ;;  %v183_v5 = vld [vmem:[#allocation10 + $0x28] sm:$0xff]  ;;  %v125_v9 = vld [vmem:[#allocation2 + $0x78] sm:$0xff] }
  0x7b   :  { %458 = vmatpush3.bf16.msra.mxu0 %v177_v35  ;;  %v163_v1 = vpack.c.bf16 %v153_v59, %v152_v58  ;;  %v186_v6 = vpack.c.bf16 %v183_v5, %v182_v4  ;;  %v140_v10 = vld [vmem:[#allocation5 + $0x70] sm:$0xff]  ;;  %v141_v11 = vld [vmem:[#allocation5 + $0x78] sm:$0xff]  ;;  %v326_v30 = vld [vmem:[#allocation8] sm:$0xff] }
  0x7c   :  { %v164_v7 = vpack.c.bf16 %v155_v3, %v154_v2  ;;  %v156_v12 = vmul.f32 %v140_v10, %v124_v8  ;;  %v157_v13 = vmul.f32 %v141_v11, %v125_v9  ;;  %v327_v31 = vld [vmem:[#allocation8 + $0x8] sm:$0xff]  ;;  %v314_v34 = vld [vmem:[#allocation11] sm:$0xff]  ;;  %v315_v35 = vld [vmem:[#allocation11 + $0x8] sm:$0xff] }
  0x7d   :  { %476 = vmatpush3.bf16.msra.mxu1 %v160_v40  ;;  %v330_v32 = vpack.c.bf16 %v327_v31, %v326_v30  ;;  %v316_v42 = vld [vmem:[#allocation11 + $0x10] sm:$0xff]  ;;  %v317_v43 = vld [vmem:[#allocation11 + $0x18] sm:$0xff]  ;;  %v318_v51 = vld [vmem:[#allocation11 + $0x20] sm:$0xff] }
  0x7e   :  { %460 = vmatmul.mubr.msk.bf16.vlgmr.msra.gmra.mrb[0].mxu0 %vm187_vm1, %v184_v39  ;;  %477 = vmatprep.subr.bf16.mxu1 %v692_v0  ;;  %v165_v14 = vpack.c.bf16 %v157_v13, %v156_v12  ;;  %v319_v52 = vld [vmem:[#allocation11 + $0x28] sm:$0xff]  ;;  %v328_v58 = vld [vmem:[#allocation8 + $0x10] sm:$0xff]  ;;  %v425_v62 = vld [vmem:[%s895_s2] ss:$0 sm:$0xff] }
  0x7f   :  { %463 = vmatprep.mubr.msk.bf16.mxu0 %vm693_vm0, %v692_v0  ;;  %v329_v59 = vld [vmem:[#allocation8 + $0x18] sm:$0xff] }
  0x80   :  { %v331_v61 = vpack.c.bf16 %v329_v59, %v328_v58 }
  0x81   :  { %478 = vmatpush3.bf16.msra.mxu1 %v161_v49 }
  0x82   :  { %479 = vmatprep.subr.bf16.mxu1 %v692_v0 }
  0x85   :  { %480 = vmatpush3.bf16.msra.mxu1 %v162_v57 }
  0x86   :  { %464 = vmatmul.mubr.msk.bf16.gmra.mrb[4].mxu0 %vm187_vm1, %v185_v56  ;;  %481 = vmatprep.subr.bf16.mxu1 %v692_v0 }
  0x87   :  { %467 = vmatprep.mubr.msk.bf16.mxu0 %vm693_vm0, %v692_v0 }
  0x89   :  { %482 = vmatpush3.bf16.msra.mxu1 %v163_v1 }
  0x8a   :  { %483 = vmatprep.subr.bf16.mxu1 %v692_v0 }
  0x8d   :  { %484 = vmatpush3.bf16.msra.mxu1 %v164_v7 }
  0x8e   :  { %468 = vmatmul.mubr.msk.bf16.gmra.mrb[8].mxu0 %vm187_vm1, %v186_v6  ;;  %485 = vmatprep.subr.bf16.mxu1 %v692_v0 }
  0x8f   :  { %505 = vmatprep.mubr.msk.bf16.mxu0 %vm342_vm2, %v330_v32 }
  0x91   :  { %486 = vmatpush3.bf16.msra.mxu1 %v165_v14 }
 0x151   :  { %v231_v15 = vpop.f32.mrb[0].mxu0 }
 0x152   :  { %v461_v16 = vpop.f32.mrb[1].mxu0 }
 0x153   :  { %v234_v17 = vpop.f32.mrb[2].mxu0 }
 0x154   :  { %v254_v18 = vpack.c.bf16 %v234_v17, %v231_v15  ;;  %v462_v19 = vpop.f32.mrb[3].mxu0 }
 0x156   :  { %488 = vmatmul.mubr.bf16.vlgmr.msra.gmra.mrb[0].mxu1 %v254_v18 }
 0x157   :  { %491 = vmatprep.mubr.msk.bf16.mxu1 %vm693_vm0, %v692_v0 }
 0x159   :  { %v239_v20 = vpop.f32.mrb[4].mxu0 }
 0x15a   :  { %v465_v21 = vpop.f32.mrb[5].mxu0 }
 0x15b   :  { %v242_v22 = vpop.f32.mrb[6].mxu0 }
 0x15c   :  { %v255_v23 = vpack.c.bf16 %v242_v22, %v239_v20  ;;  %v466_v24 = vpop.f32.mrb[7].mxu0 }
 0x15e   :  { %492 = vmatmul.mubr.bf16.gmra.mrb[4].mxu1 %v255_v23 }
 0x15f   :  { %495 = vmatprep.mubr.msk.bf16.mxu1 %vm693_vm0, %v692_v0 }
 0x161   :  { %v247_v25 = vpop.f32.mrb[8].mxu0 }
 0x162   :  { %v469_v26 = vpop.f32.mrb[9].mxu0 }
 0x163   :  { %v250_v27 = vpop.f32.mrb[10].mxu0 }
 0x164   :  { %v256_v28 = vpack.c.bf16 %v250_v27, %v247_v25  ;;  %v470_v29 = vpop.f32.mrb[11].mxu0 }
 0x166   :  { %496 = vmatmul.mubr.bf16.gmra.mrb[8].mxu1 %v256_v28 }
 0x229   :  { %v291_v33 = vpop.f32.mrb[0].mxu1 }
 0x22a   :  { %v489_v36 = vpop.f32.mrb[1].mxu1  ;;  %v320_v38 = vmul.f32 %v314_v34, %v291_v33 }
 0x22b   :  { %v294_v37 = vpop.f32.mrb[2].mxu1 }
 0x22c   :  { %v321_v39 = vmul.f32 %v315_v35, %v294_v37  ;;  %v490_v0 = vpop.f32.mrb[3].mxu1 }
 0x22e   :  { %v332_v40 = vpack.c.bf16 %v321_v39, %v320_v38 }
 0x230   :  { %499 = vmatprep.subr.bf16.mxu0 %v332_v40 }
 0x231   :  { %v299_v41 = vpop.f32.mrb[4].mxu1  ;;  %500 = vmatpush3.bf16.msra.mxu0 %v332_v40 }
 0x232   :  { %v493_v44 = vpop.f32.mrb[5].mxu1  ;;  %v322_v46 = vmul.f32 %v316_v42, %v299_v41 }
 0x233   :  { %v302_v45 = vpop.f32.mrb[6].mxu1 }
 0x234   :  { %v323_v47 = vmul.f32 %v317_v43, %v302_v45  ;;  %v494_v48 = vpop.f32.mrb[7].mxu1 }
 0x236   :  { %v333_v49 = vpack.c.bf16 %v323_v47, %v322_v46 }
 0x238   :  { %501 = vmatprep.subr.bf16.mxu0 %v333_v49 }
 0x239   :  { %v307_v50 = vpop.f32.mrb[8].mxu1  ;;  %502 = vmatpush3.bf16.msra.mxu0 %v333_v49 }
 0x23a   :  { %v497_v53 = vpop.f32.mrb[9].mxu1  ;;  %v324_v55 = vmul.f32 %v318_v51, %v307_v50 }
 0x23b   :  { %v310_v54 = vpop.f32.mrb[10].mxu1 }
 0x23c   :  { %v325_v56 = vmul.f32 %v319_v52, %v310_v54  ;;  %v498_v57 = vpop.f32.mrb[11].mxu1 }
 0x23e   :  { %v334_v60 = vpack.c.bf16 %v325_v56, %v324_v55 }
 0x240   :  { %503 = vmatprep.subr.bf16.mxu0 %v334_v60 }
 0x241   :  { %504 = vmatpush3.bf16.msra.mxu0 %v334_v60 }
 0x244   :  { %506 = vmatmul.mubr.msk.bf16.vlgmr.msra.gmra.mrb[12].mxu0 %vm342_vm2, %v331_v61 }
 0x317   :  { %v507_v63 = vpop.f32.mrb[12].mxu0 }
 0x318   :  { %v392_v1 = vadd.f32 %v507_v63, %v425_v62  ;;  %v383_v2 = vpop.f32.mrb[13].mxu0 }
 0x319   :  { %v384_v3 = vadd.f32 %v425_v62, %v383_v2  ;;  %v508_v4 = vpop.f32.mrb[14].mxu0 }
 0x31a   :  { %400 = vst [vmem:[#allocation13 + $0x10] sm:$0xff] %v392_v1  ;;  %v395_v5 = vadd.f32 %v508_v4, %v425_v62  ;;  %v386_v6 = vpop.f32.mrb[15].mxu0 }
 0x31b   :  { %398 = vst [vmem:[#allocation13] sm:$0xff] %v384_v3  ;;  %v387_v7 = vadd.f32 %v425_v62, %v386_v6 }
 0x31c   :  { %401 = vst [vmem:[#allocation13 + $0x18] sm:$0xff] %v395_v5 }
 0x31d   :  { %399 = vst [vmem:[#allocation13 + $0x8] sm:$0xff] %v387_v7 }
 0x31e   :  { %663 = shalt.err (!%p660_p10)
}
 0x31f   :  { %s664_s8 = scalar_lea.hbm %s900_s7, 512 }
 0x320   :  { %p665_p11 = scmp.ne.s32.totalorder %s900_s7, %s664_s8  ;;  %p668_p12 = scmp.lt.u32.totalorder %s664_s8, %s900_s7 }
 0x322   :  { %p670_p13 = pnand %p668_p12, %p665_p11 }
 0x324   :  { %673 = shalt.err (!%p670_p13)
}
 0x325   :  { %413 = dma.vmem_to_hbm [thread:$0]  %s408_s26, 512, %s900_s7, [#allocation4], %s686_s13, %s686_s13, %s687_s14  }
 0x326   :  { %682 = dma.done.wait [#allocation4], 512  }
 0x327   :  { %683 = vsyncadd [#allocation4], 4294966784 }
 0x328   :  { %417 = vsyncpa [#allocation3], 1 }
 0x329   :  { %418 = vsyncpa [#allocation6], 1 }
 0x32a   :  { %419 = vsyncpa [#allocation9], 1 }
 0x32b   :  { %420 = vsyncpa [#allocation12], 1 }
 0x32c   :  { %421 = vsyncpa [#allocation4], 1 }

</bundles_post_ra>
